<compile_context>
chip_gen: v7x
topology: tpu7x:2x2x1
jax: 0.10.0
libtpu: 0.0.40
codegen_flags: <defaults>
</compile_context>

<pallas_src>
import functools

import jax
import jax.numpy as jnp
from jax.experimental import pallas as pl
from jax.experimental.pallas import tpu as pltpu

_MIB = 1024 * 1024


def _round_down(x, m):
    return (x // m) * m


def _vmem_capacity_bytes():
    """Physical VMEM per core (v5e/v6e: 128 MiB, v7x: 64 MiB); safe fallback."""
    try:
        info = pltpu.get_tpu_info()
        cap = getattr(info, "vmem_capacity_bytes", None)
        if cap:
            return int(cap)
    except Exception:
        pass
    return 64 * _MIB  # conservative (v7x-sized) default


def _compiler_params(dim_sem, live_bytes, vmem_cap):
    """Explicit scoped-VMEM limit: actual live block bytes + headroom."""
    limit = int(min(vmem_cap - 2 * _MIB, max(live_bytes + 8 * _MIB, 16 * _MIB)))
    return pltpu.CompilerParams(dimension_semantics=dim_sem,
                                vmem_limit_bytes=limit)


# --------------------------------------------------------------------------
# Single-pass kernel: whole (1, C, S) slab resident in VMEM per grid step.
# --------------------------------------------------------------------------
def _se_fused_kernel(x_ref, w1_ref, w2_ref, o_ref, *, inv_s):
    # x_ref/o_ref: (1, C, S) input dtype ; w1: (C//r, C) f32 ; w2: (C, C//r) f32
    x = x_ref[...]                                            # keep input dtype

    # Squeeze: f32 accumulation over the true spatial extent (full-extent block,
    # so there are no garbage lanes and no masking is needed).
    y = jnp.sum(x.astype(jnp.float32), axis=-1) * inv_s       # (1, C)

    # Excitation MLP (C -> C//r -> C), contracting the trailing (input) axis of
    # the PyTorch-layout weights with elementwise-mul + lane reduce: exact f32,
    # no transposes, no 1-row MXU matmul.
    h = jnp.sum(w1_ref[...][None, :, :] * y[:, None, :], axis=-1)   # (1, C//r)
    h = jnp.where(h >= 0, h, 0.2 * h)                                # LeakyReLU
    g = jnp.sum(w2_ref[...][None, :, :] * h[:, None, :], axis=-1)   # (1, C)
    g = jax.nn.sigmoid(g)

    # Scale: broadcast multiply in the input dtype (no f32 copy of x).
    o_ref[...] = x * g.astype(x.dtype)[:, :, None]


# --------------------------------------------------------------------------
# Two-pass kernels: tiled sum reduction, then tiled broadcast-multiply.
# --------------------------------------------------------------------------
def _se_mean_kernel(x_ref, sum_ref, *, ts, s, masked):
    # x_ref: (1, CB, TS) input dtype ; sum_ref: (1, CB, 1) f32 accumulator,
    # resident across the (innermost, "arbitrary") spatial reduction axis.
    t = pl.program_id(2)

    @pl.when(t == 0)
    def _():
        sum_ref[...] = jnp.zeros_like(sum_ref)

    x = x_ref[...].astype(jnp.float32)                        # (1, CB, TS)
    if masked:
        # Ragged last tile: lanes beyond the true extent hold garbage (the DMA
        # is clipped at the array edge) and MUST be zeroed before the sum.
        n_valid = jnp.minimum(s - t * ts, ts)
        lane = jax.lax.broadcasted_iota(jnp.int32, (1, 1, ts), 2)
        x = jnp.where(lane < n_valid, x, 0.0)
    sum_ref[...] += jnp.sum(x, axis=-1, keepdims=True)


def _se_scale_kernel(g_ref, x_ref, o_ref):
    # g_ref: (1, C, 1) f32 gate ; x_ref/o_ref: (1, C, TS) input dtype.
    # Ragged last tile: garbage input lanes are multiplied but never stored
    # (Pallas clips the ragged output block's stores).
    x = x_ref[...]
    o_ref[...] = x * g_ref[...].astype(x.dtype)


# --------------------------------------------------------------------------
# Wrapper
# --------------------------------------------------------------------------
def se_layer(x, w1, w2, *, max_block_bytes=None, vmem_cap=None):
    """SELayer forward.  x: (B, C, D, H, W); w1: (C//r, C); w2: (C, C//r)."""
    b, c, d, h, w = x.shape
    s = d * h * w
    itemsize = jnp.dtype(x.dtype).itemsize
    w1f = w1.astype(jnp.float32)
    w2f = w2.astype(jnp.float32)
    w_bytes = (w1f.size + w2f.size) * 4

    if vmem_cap is None:
        vmem_cap = _vmem_capacity_bytes()
    if max_block_bytes is None:
        # Generation-aware live-block budget: ~half of physical VMEM.
        # (v7x: 64 MiB -> 32 MiB budget; v5e/v6e: 128 MiB -> 64 MiB budget.)
        max_block_bytes = min(vmem_cap // 2, 64 * _MIB)

    x_flat = x.reshape(b, c, s)          # metadata reshape only, no HBM pass
    f32_temp = 4 if itemsize < 4 else 0  # conversion temp bytes/elem (bf16 etc.)

    # ---------------- single-pass fused path (2 HBM passes) ------------------
    # Live VMEM: in + out slabs double-buffered (4x) + f32 reduce temp for
    # sub-32-bit dtypes, plus the (tiny) weights.
    fused_per_elem = c * (4 * itemsize + f32_temp)
    fused_live = s * fused_per_elem + w_bytes
    if fused_live <= max_block_bytes:
        out_flat = pl.pallas_call(
            functools.partial(_se_fused_kernel, inv_s=1.0 / s),
            out_shape=jax.ShapeDtypeStruct((b, c, s), x.dtype),
            grid_spec=pltpu.PrefetchScalarGridSpec(
                num_scalar_prefetch=0,
                grid=(b,),
                in_specs=[
                    pl.BlockSpec((1, c, s), lambda i: (i, 0, 0)),   # full extent
                    pl.BlockSpec(w1f.shape, lambda i: (0, 0)),      # constant:
                    pl.BlockSpec(w2f.shape, lambda i: (0, 0)),      # not re-DMA'd
                ],
                out_specs=pl.BlockSpec((1, c, s), lambda i: (i, 0, 0)),
            ),
            compiler_params=_compiler_params(("parallel",), fused_live, vmem_cap),
            cost_estimate=pl.CostEstimate(
                flops=int(3 * b * c * s),
                transcendentals=int(2 * b * c),
                bytes_accessed=int(2 * b * c * s * itemsize)),
        )(x_flat, w1f, w2f)
        return out_flat.reshape(b, c, d, h, w)

    # ---------------- two-pass path: reduce -> XLA gate MLP -> scale ----------
    # Pass 1 (sum): only the input block is double-buffered (the accumulator is
    # resident), so it gets its own, larger tile.  A channel-block axis gives a
    # second "parallel" grid dimension so both v7x TensorCores are busy when
    # B == 1; the spatial axis stays the innermost "arbitrary" reduction axis.
    pack = max(8, 32 // itemsize)           # sublane pack: 8 f32 / 16 bf16
    nc, cb = 1, c
    if b < 2 and c % (2 * pack) == 0:
        nc, cb = 2, c // 2

    mean_per_elem = cb * (2 * itemsize + 4)          # 2 input bufs + f32 temp
    ts_mean = max(128, _round_down(max_block_bytes // mean_per_elem, 128))
    if ts_mean >= s:
        ts_mean = s                                   # full extent, single tile
    nt_mean = pl.cdiv(s, ts_mean)
    mean_live = cb * ts_mean * (2 * itemsize + 4) + 8 * cb

    sums = pl.pallas_call(
        functools.partial(_se_mean_kernel, ts=ts_mean, s=s,
                          masked=(s % ts_mean) != 0),
        out_shape=jax.ShapeDtypeStruct((b, c, 1), jnp.float32),
        grid_spec=pltpu.PrefetchScalarGridSpec(
            num_scalar_prefetch=0,
            grid=(b, nc, nt_mean),
            in_specs=[pl.BlockSpec((1, cb, ts_mean), lambda i, j, t: (i, j, t))],
            out_specs=pl.BlockSpec((1, cb, 1), lambda i, j, t: (i, j, 0)),
        ),
        compiler_params=_compiler_params(
            ("parallel", "parallel", "arbitrary"), mean_live, vmem_cap),
        cost_estimate=pl.CostEstimate(
            flops=int(b * c * s), transcendentals=0,
            bytes_accessed=int(b * c * s * itemsize + b * c * 4)),
    )(x_flat)

    # Excitation MLP off the streaming path: one tiny XLA op for all B gates.
    y = sums[:, :, 0] * (1.0 / s)                                 # (B, C) f32
    hid = jnp.dot(y, w1f.T, precision=jax.lax.Precision.HIGHEST)
    hid = jnp.where(hid >= 0, hid, 0.2 * hid)                     # LeakyReLU(0.2)
    gate = jax.nn.sigmoid(
        jnp.dot(hid, w2f.T, precision=jax.lax.Precision.HIGHEST))
    gate = gate[:, :, None]                                       # (B, C, 1) f32

    # Pass 2: broadcast multiply in the input dtype, both grid axes parallel.
    ts_scale = max(128, _round_down(max_block_bytes // (4 * c * itemsize), 128))
    if ts_scale >= s:
        ts_scale = s
    nt_scale = pl.cdiv(s, ts_scale)
    scale_live = 4 * c * ts_scale * itemsize + 16 * c

    out_flat = pl.pallas_call(
        _se_scale_kernel,
        out_shape=jax.ShapeDtypeStruct((b, c, s), x.dtype),
        grid_spec=pltpu.PrefetchScalarGridSpec(
            num_scalar_prefetch=0,
            grid=(b, nt_scale),
            in_specs=[
                pl.BlockSpec((1, c, 1), lambda i, t: (i, 0, 0)),
                pl.BlockSpec((1, c, ts_scale), lambda i, t: (i, 0, t)),
            ],
            out_specs=pl.BlockSpec((1, c, ts_scale), lambda i, t: (i, 0, t)),
        ),
        compiler_params=_compiler_params(("parallel", "parallel"),
                                         scale_live, vmem_cap),
        cost_estimate=pl.CostEstimate(
            flops=int(b * c * s), transcendentals=0,
            bytes_accessed=int(2 * b * c * s * itemsize + b * c * 4)),
    )(gate, x_flat)

    return out_flat.reshape(b, c, d, h, w)


# --------------------------------------------------------------------------
# Pure-JAX reference mirroring the PyTorch module.
# --------------------------------------------------------------------------
def se_layer_ref(x, w1, w2):
    y = jnp.mean(x.astype(jnp.float32), axis=(2, 3, 4))           # (B, C)
    h = jnp.dot(y, w1.astype(jnp.float32).T,
                precision=jax.lax.Precision.HIGHEST)
    h = jnp.where(h >= 0, h, 0.2 * h)
    g = jax.nn.sigmoid(jnp.dot(h, w2.astype(jnp.float32).T,
                               precision=jax.lax.Precision.HIGHEST))
    return (x * g.astype(x.dtype)[:, :, None, None, None]).astype(x.dtype)


if __name__ == "__main__":
    key = jax.random.PRNGKey(0)
    kx, k1, k2, k3, k4 = jax.random.split(key, 5)

    def check(name, x, w1, w2, tol, **kw):
        out = jax.block_until_ready(se_layer(x, w1, w2, **kw))
        ref = se_layer_ref(x, w1, w2)
        assert out.shape == x.shape and out.dtype == x.dtype, name
        ok = jnp.allclose(out.astype(jnp.float32), ref.astype(jnp.float32),
                          atol=tol, rtol=tol)
        assert ok, f"{name} mismatch"

    # Weights for C=8, reduction=4 -> hidden=2.
    C = 8
    w1 = jax.random.normal(k1, (C // 4, C), jnp.float32) * (1.0 / jnp.sqrt(C))
    w2 = jax.random.normal(k2, (C, C // 4), jnp.float32) * (1.0 / jnp.sqrt(C // 4))

    # 1) Single-pass fused path (slab fits), spatial multiple of 128.
    x1 = jax.random.normal(kx, (2, C, 4, 8, 8), jnp.float32)
    check("fused f32", x1, w1, w2, 1e-5)

    # 2) Fused path with spatial size not a multiple of 128 (full-extent block).
    x2 = jax.random.normal(kx, (2, C, 3, 5, 7), jnp.float32)
    check("fused f32 ragged-S", x2, w1, w2, 1e-5)

    # 3) Two-pass f32 with ragged last tile (forced via tiny budget): S=288.
    x3 = jax.random.normal(kx, (2, C, 4, 8, 9), jnp.float32)
    check("two-pass f32 ragged tiles", x3, w1, w2, 1e-5,
          max_block_bytes=32 * 1024)

    # 4) bf16 fused path (gate math in f32, streaming stays bf16).
    x4 = x1.astype(jnp.bfloat16)
    check("fused bf16", x4, w1, w2, 2e-2)

    # 5) bf16 two-pass with ragged tiles (forced via tiny budget).
    x5 = x3.astype(jnp.bfloat16)
    check("two-pass bf16 ragged tiles", x5, w1, w2, 2e-2,
          max_block_bytes=8 * 1024)

    # 6) Batch=1, C=16: exercises the channel-split "parallel" axis of pass 1.
    C2 = 16
    w1b = jax.random.normal(k3, (C2 // 4, C2), jnp.float32) * (1.0 / jnp.sqrt(C2))
    w2b = jax.random.normal(k4, (C2, C2 // 4), jnp.float32) * 0.5
    x6 = jax.random.normal(kx, (1, C2, 4, 8, 9), jnp.float32)
    check("two-pass b1 channel-split", x6, w1b, w2b, 1e-5,
          max_block_bytes=32 * 1024)

    print("KERNEL_OK")
</pallas_src>

<mosaic_0001>
module attributes {stable_mosaic.version = 11 : i64} {
  func.func @_se_fused_kernel(%arg0: i32, %arg1: memref<1x8x256xf32, #tpu.memory_space<vmem>>, %arg2: memref<2x8xf32, #tpu.memory_space<vmem>>, %arg3: memref<8x2xf32, #tpu.memory_space<vmem>>, %arg4: memref<1x8x256xf32, #tpu.memory_space<vmem>>) attributes {dimension_semantics = [#tpu.dimension_semantics<parallel>], iteration_bounds = array<i64: 2>, scalar_prefetch = 0 : i64, scratch_operands = 0 : i64, tpu.core_type = #tpu.core_type<tc>, window_params = [{transform_indices = @transform_0, window_bounds = array<i64: 1, 8, 256>}, {pipeline_mode = #tpu.pipeline_mode<synchronous>, transform_indices = @transform_1, window_bounds = array<i64: 2, 8>}, {pipeline_mode = #tpu.pipeline_mode<synchronous>, transform_indices = @transform_2, window_bounds = array<i64: 8, 2>}, {transform_indices = @transform_3, window_bounds = array<i64: 1, 8, 256>}]} {
    %c0 = arith.constant 0 : index
    %c0_0 = arith.constant 0 : index
    %c0_1 = arith.constant 0 : index
    %0 = vector.load %arg1[%c0, %c0_0, %c0_1] : memref<1x8x256xf32, #tpu.memory_space<vmem>>, vector<1x8x256xf32>
    %cst = arith.constant dense<0.000000e+00> : vector<1x8xf32>
    %1 = vector.multi_reduction <add>, %0, %cst [2] : vector<1x8x256xf32> to vector<1x8xf32>
    %cst_2 = arith.constant 3.906250e-03 : f32
    %2 = vector.broadcast %cst_2 : f32 to vector<1x8xf32>
    %3 = arith.mulf %1, %2 : vector<1x8xf32>
    %c0_3 = arith.constant 0 : index
    %c0_4 = arith.constant 0 : index
    %4 = vector.load %arg2[%c0_3, %c0_4] : memref<2x8xf32, #tpu.memory_space<vmem>>, vector<2x8xf32>
    %5 = vector.shape_cast %4 : vector<2x8xf32> to vector<1x2x8xf32>
    %6 = vector.shape_cast %3 : vector<1x8xf32> to vector<1x1x8xf32>
    %7 = vector.broadcast %6 : vector<1x1x8xf32> to vector<1x2x8xf32>
    %8 = arith.mulf %5, %7 : vector<1x2x8xf32>
    %cst_5 = arith.constant dense<0.000000e+00> : vector<1x2xf32>
    %9 = vector.multi_reduction <add>, %8, %cst_5 [2] : vector<1x2x8xf32> to vector<1x2xf32>
    %cst_6 = arith.constant 0.000000e+00 : f32
    %10 = vector.broadcast %cst_6 : f32 to vector<1x2xf32>
    %11 = arith.cmpf oge, %9, %10 : vector<1x2xf32>
    %cst_7 = arith.constant 2.000000e-01 : f32
    %12 = vector.broadcast %cst_7 : f32 to vector<1x2xf32>
    %13 = arith.mulf %12, %9 : vector<1x2xf32>
    %14 = arith.select %11, %9, %13 : vector<1x2xi1>, vector<1x2xf32>
    %c0_8 = arith.constant 0 : index
    %c0_9 = arith.constant 0 : index
    %15 = vector.load %arg3[%c0_8, %c0_9] : memref<8x2xf32, #tpu.memory_space<vmem>>, vector<8x2xf32>
    %16 = vector.shape_cast %15 : vector<8x2xf32> to vector<1x8x2xf32>
    %17 = vector.shape_cast %14 : vector<1x2xf32> to vector<1x1x2xf32>
    %18 = vector.broadcast %17 : vector<1x1x2xf32> to vector<1x8x2xf32>
    %19 = arith.mulf %16, %18 : vector<1x8x2xf32>
    %cst_10 = arith.constant dense<0.000000e+00> : vector<1x8xf32>
    %20 = vector.multi_reduction <add>, %19, %cst_10 [2] : vector<1x8x2xf32> to vector<1x8xf32>
    %21 = arith.negf %20 : vector<1x8xf32>
    %22 = math.exp %21 : vector<1x8xf32>
    %cst_11 = arith.constant 1.000000e+00 : f32
    %23 = vector.broadcast %cst_11 : f32 to vector<1x8xf32>
    %24 = arith.addf %23, %22 : vector<1x8xf32>
    %25 = arith.divf %23, %24 : vector<1x8xf32>
    %26 = vector.shape_cast %25 : vector<1x8xf32> to vector<1x8x1xf32>
    %27 = vector.broadcast %26 : vector<1x8x1xf32> to vector<1x8x256xf32>
    %28 = arith.mulf %0, %27 : vector<1x8x256xf32>
    %c0_12 = arith.constant 0 : index
    %c0_13 = arith.constant 0 : index
    %c0_14 = arith.constant 0 : index
    %29 = vector.load %arg4[%c0_12, %c0_13, %c0_14] : memref<1x8x256xf32, #tpu.memory_space<vmem>>, vector<1x8x256xf32>
    tpu.vector_store %arg4[%c0_12, %c0_13, %c0_14], %28 {strides = array<i32>} : memref<1x8x256xf32, #tpu.memory_space<vmem>>, vector<1x8x256xf32>,
    return
  }
  func.func @transform_0(%arg0: i32) -> (i32, i32, i32) {
    %c0_i32 = arith.constant 0 : i32
    %c0_i32_0 = arith.constant 0 : i32
    %c0_i32_1 = arith.constant 0 : i32
    return %arg0, %c0_i32, %c0_i32_0 : i32, i32, i32
  }
  func.func @transform_1(%arg0: i32) -> (i32, i32) {
    %c0_i32 = arith.constant 0 : i32
    %c0_i32_0 = arith.constant 0 : i32
    %c0_i32_1 = arith.constant 0 : i32
    return %c0_i32, %c0_i32_0 : i32, i32
  }
  func.func @transform_2(%arg0: i32) -> (i32, i32) {
    %c0_i32 = arith.constant 0 : i32
    %c0_i32_0 = arith.constant 0 : i32
    %c0_i32_1 = arith.constant 0 : i32
    return %c0_i32, %c0_i32_0 : i32, i32
  }
  func.func @transform_3(%arg0: i32) -> (i32, i32, i32) {
    %c0_i32 = arith.constant 0 : i32
    %c0_i32_0 = arith.constant 0 : i32
    %c0_i32_1 = arith.constant 0 : i32
    return %arg0, %c0_i32, %c0_i32_0 : i32, i32, i32
  }
}

</mosaic_0001>

<bundles_post_ra>
// kernel: tpu_custom_call.1
= control target key start
LH: loop header
LB: loop body
LE: loop exit
PB: predicated region body
PF: predicated region fallthrough
CT: control target
= control target key end

     0   :  { %8 = vsyncpa [#allocation3], 0  ;;  %s687_s0 = inlined_call_operand.hbm [shape: f32[2,8,256], index: 0, kind: input, shape index: {}]   ;;  %s688_s1 = inlined_call_operand.vmem [shape: f32[2,8], index: 1, kind: input, shape index: {}]   ;;  %s689_s2 = inlined_call_operand.vmem [shape: f32[8,2], index: 2, kind: input, shape index: {}]   ;;  %s690_s3 = inlined_call_operand.hbm [shape: f32[2,8,256], index: 3, kind: output, shape index: {}]  }
   0x1   :  { %10 = vsyncpa [#allocation3 + $0x1], 0 }
   0x2   :  { %11 = vsyncpa [#allocation4], 0 }
   0x3   :  { %13 = vsyncpa [#allocation4 + $0x1], 0  ;;  %s516_s12 = smov 0   ;;  %s518_s13 = smov 0  }
   0x4   :  { %s520_s14 = smov 0   ;;  %s522_s15 = smov 0  }
   0x5 LB: > { %s537_s16 = sadd.s32 4294967295, %s492_s15   ;;  %s329_s17 = sadd.s32 4294967294, %s492_s15   ;;  %s492_s15 = sphi %s522_s15, %s705_s15   ;;  %s488_s14 = sphi %s520_s14, %s704_s14   ;;  %s484_s13 = sphi %s518_s13, %s703_s13   ;;  %s480_s12 = sphi %s516_s12, %s702_s12  }
   0x6   : > { %s541_s18 = sadd.s32 1, %s492_s15   ;;  %s26_s19 = sadd.s32 1, %s488_s14 }
   0x7   : > { %s23_s20 = ssub.s32 %s492_s15, %s541_s18  ;;  %p33_p0 = scmp.ne.s32.totalorder %s488_s14, %s484_s13 }
   0x8   : > { %p24_p1 = scmp.eq.s32.totalorder %s23_s20, 0  ;;  %p34_p2 = scmp.eq.s32.totalorder %s492_s15, 0 }
   0x9   : > { %p39_p3 = scmp.ne.s32.totalorder %s484_s13, %s480_s12  ;;  %p40_p4 = scmp.eq.s32.totalorder %s537_s16, 0 }
   0xa   : > { %s553_s21 = scalar_select %p24_p1, %s488_s14, %s26_s19  }
   0xb   : > { %p555_p5 = por %p34_p2, %p33_p0  ;;  %p559_p6 = por %p40_p4, %p39_p3 }
   0xc   : > { %p105_p7 = scmp.eq.s32.totalorder %s537_s16, 1  ;;  %p111_p8 = scmp.eq.s32.totalorder %s329_s17, 1 }
   0xd   : > { %p358_p10 = scmp.lt.s32.totalorder %s492_s15, 2  ;;  %s137_s26 = sand.u32 1, %s488_s14  }
   0xe   : > { %p566_p11 = por %p105_p7, %p33_p0  ;;  %p570_p12 = por %p111_p8, %p39_p3 }
   0xf   : > { %s344_s27 = sshll.u32 %s492_s15, 8  ;;  %s332_s28 = sshll.u32 %s137_s26, 4 }
  0x10   : > { %s694_s24 = scalar_select %p566_p11, 1, 0 }
  0x11   : > { %s695_s25 = scalar_select %p570_p12, 1, 0 }
  0x12   : > { %s579_s4 = scalar_lea.hbm %s687_s0, %s344_s27  ;;  %s141_s5 = scalar_lea.vmem [#allocation2], %s332_s28 }
  0x13   : > { %s149_s6 = sshll.u32 %s141_s5, 4  ;;  %p583_p13 = pnand %p358_p10, %p555_p5  ;;  %s587_s6 = int_to_ptr.vmem [resolvable:$true] %s149_s6 }
  0x14   : > { %s138_s8 = scalar_lea.sflag [#allocation3], %s137_s26  ;;  %s396_s9 = scalar_lea.hbm %s579_s4, 256 }
  0x15   : > { %p397_p2 = scmp.ne.s32.totalorder %s579_s4, %s396_s9  ;;  %p398_p3 = pneg %p583_p13 }
  0x16   : > { %s401_s17 = scalar_lea.hbm %s687_s0, 512  ;;  %p402_p5 = scmp.lt.u32.totalorder %s579_s4, %s687_s0 }
  0x17   : > { %p399_p4 = pnand %p398_p3, %p397_p2  ;;  %p403_p8 = scmp.lt.u32.totalorder %s401_s17, %s396_s9 }
  0x18   : > { %p405_p9 = scmp.lt.u32.totalorder %s396_s9, %s579_s4 }
  0x19   : > { %p400_p7 = pneg %p399_p4  ;;  %p404_p10 = por %p403_p8, %p402_p5 }
  0x1b   : > { %p406_p0 = por %p405_p9, %p404_p10 }
  0x1d   : > { %p407_p1 = pnand %p406_p0, %p400_p7 }
  0x1f   : > { %410 = shalt.err (!%p407_p1)
}
  0x20   : > { %s411_s22 = scalar_lea.vmem %s587_s6, 256  ;;  %s494_s26 = smov [#allocation2]  }
  0x21   : > { %p412_p2 = scmp.ne.s32.totalorder %s587_s6, %s411_s22  ;;  %s416_s27 = sshll.u32 %s494_s26, 4  ;;  %s417_s27 = int_to_ptr.vmem [resolvable:$false] %s416_s27 }
  0x22   : > { %s418_s28 = scalar_lea.vmem %s417_s27, 512  ;;  %p419_p11 = scmp.lt.s32.totalorder %s587_s6, %s417_s27 }
  0x23   : > { %p414_p4 = pnand %p412_p2, %p398_p3  ;;  %p420_p5 = scmp.lt.s32.totalorder %s418_s28, %s411_s22 }
  0x25   : > { %p415_p12 = pneg %p414_p4  ;;  %p421_p8 = por %p420_p5, %p419_p11 }
  0x27   : > { %p422_p9 = pnand %p421_p8, %p415_p12 }
  0x29   : > { %425 = shalt.err (!%p422_p9)
}
  0x2a   : > { %353 = dma.hbm_to_vmem [thread:$0]  (!%p583_p13), %s579_s4, 256, %s587_s6, %s138_s8  }
  0x2b   : > { %p697_p0 = scmp.lt.s32.totalorder %s492_s15, 3  ;;  %p698_p1 = scmp.ge.s32.totalorder %s492_s15, 1 }
  0x2d   : > { %p155_p3 = pnand %p698_p1, %p697_p0 }
  0x2e   : > { %s621_s29 = sand.u32 (!%p155_p3), 1, %s484_s13  }
  0x2f   : > { %158 = sbr.rel (%p155_p3) target bundleno = 541 (0x21d), region = 32  ;;  %s336_s30 = sshll.u32 (!%p155_p3), %s621_s29, 4 }
  0x30   : > { %s161_s5 = scalar_lea.sflag (!%p155_p3), [#allocation3], %s621_s29  ;;  %s164_s7 = scalar_lea.vmem (!%p155_p3), [#allocation2], %s336_s30 }
  0x36   : > { %471 = dma.done.wait (%p559_p6), %s161_s5, 256  }
  0x37   : > { %473 = vsyncadd (%p559_p6), %s161_s5, 4294967040  ;;  %v187_v0 = vld [vmem:[%s164_s7] sm:$0xff]  ;;  %v188_v1 = vld [vmem:[%s164_s7 + $0x8] sm:$0xff]  ;;  %v195_v3 = vlaneseq  ;;  %vm203_vm0 = vcmask 58368   ;;  %vm230_vm2 = vcmask 15360   ;;  %s345_s9 = sshll.u32 %s537_s16, 8 }
  0x38   : > { %v189_v2 = vadd.f32 %v188_v1, %v187_v0  ;;  %v193_v9 = vld [vmem:[%s688_s1] sm:$0x3]  ;;  %s186_s10 = scalar_lea.vmem [#allocation5], %s336_s30  ;;  %s643_s20 = scalar_lea.hbm %s690_s3, %s345_s9 }
  0x39   : > { %v196_v4 = vand.u32 127, %v195_v3  ;;  %v198_v5 = vshrl.u32 %v195_v3, 7  ;;  %v210_v16 = vld [vmem:[%s689_s2] sm:$0xff]  ;;  %s259_s11 = sshll.u32 %s186_s10, 4  ;;  %s245_s22 = scalar_lea.sflag [#allocation4], %s621_s29  ;;  %s645_s11 = int_to_ptr.vmem [resolvable:$true] %s259_s11 }
  0x3a   : > { %190 = vadd.xlane.f32.xlu0 %v189_v2  ;;  %s426_s16 = scalar_lea.vmem %s645_s11, 256  ;;  %p699_p11 = scmp.ne.s32.totalorder %s694_s24, 0 }
  0x3b   : > { %v199_v6 = vsub.s32 %v196_v4, %v198_v5  ;;  %p427_p6 = scmp.ne.s32.totalorder %s645_s11, %s426_s16  ;;  %s495_s26 = smov [#allocation5]  }
  0x3c   : > { %s430_s27 = sshll.u32 %s495_s26, 4  ;;  %s431_s27 = int_to_ptr.vmem [resolvable:$false] %s430_s27 }
  0x3d   : > { %p428_p12 = pnand %p427_p6, %p699_p11  ;;  %s432_s28 = scalar_lea.vmem %s431_s27, 512 }
  0x3e   : > { %p433_p7 = scmp.lt.s32.totalorder %s645_s11, %s431_s27  ;;  %p434_p10 = scmp.lt.s32.totalorder %s432_s28, %s426_s16 }
  0x3f   : > { %p429_p13 = pneg %p428_p12 }
  0x40   : > { %p435_p2 = por %p434_p10, %p433_p7 }
  0x42   : > { %p436_p4 = pnand %p435_p2, %p429_p13 }
  0xc7   : > { %v191_v7 = vpop.xlane.xlu0 %190 }
  0xc8   : > { %v192_v8 = vmul.f32 0.00390625, %v191_v7 }
  0xca   : > { %v200_v10 = vrot.slane %v192_v8, %v199_v6 }
  0xcc   : > { %v202_v11 = vmul.f32 %v200_v10, %v193_v9 }
  0xce   : > { %v204_v12 = vsel %vm203_vm0, %v202_v11, 0.0 }
  0xcf   : > { %205 = vadd.xlane.f32.xlu0 %v204_v12 }
 0x15c   : > { %v206_v13 = vpop.xlane.xlu0 %205 }
 0x15d   : > { %vm207_vm1 = vcmp.ge.f32.partialorder %v206_v13, 0.0  ;;  %v208_v14 = vmul.f32 0.2, %v206_v13 }
 0x15f   : > { %v209_v15 = vsel %vm207_vm1, %v206_v13, %v208_v14 }
 0x160   : > { %v215_v17 = vrot.slane %v209_v15, %v199_v6 }
 0x162   : > { %v229_v18 = vmul.f32 %v215_v17, %v210_v16 }
 0x164   : > { %v231_v19 = vsel %vm230_vm2, %v229_v18, 0.0 }
 0x165   : > { %232 = vadd.xlane.f32.xlu1 %v231_v19 }
 0x1f2   : > { %v233_v20 = vpop.xlane.xlu1 %232 }
 0x1f3   : > { %v338_v21 = vmul.f32 -1.442695, %v233_v20 }
 0x1f5   : > { %392 = vpow2.f32 %v338_v21 }
 0x1ff   : > { %v393_v22 = vpop.eup %392 }
 0x200   : > { %v237_v23 = vadd.f32 1.0, %v393_v22 }
 0x202   : > { %394 = vrcp.f32 %v237_v23 }
 0x20c   : > { %v395_v24 = vpop.eup %394 }
 0x20d   : > { %v240_v25 = vmul.f32 %v395_v24, %v187_v0  ;;  %v241_v26 = vmul.f32 %v395_v24, %v188_v1 }
 0x20f   : > { %242 = vst [vmem:[%s186_s10] sm:$0xff] %v240_v25  ;;  %243 = vst [vmem:[%s186_s10 + $0x8] sm:$0xff] %v241_v26 }
 0x210   : > { %439 = shalt.err (!%p436_p4)
}
 0x211   : > { %s440_s29 = scalar_lea.hbm %s643_s20, 256  ;;  %s444_s7 = scalar_lea.hbm %s690_s3, 512 }
 0x212   : > { %p441_p5 = scmp.ne.s32.totalorder %s643_s20, %s440_s29  ;;  %p445_p0 = scmp.lt.u32.totalorder %s643_s20, %s690_s3 }
 0x213   : > { %p446_p1 = scmp.lt.u32.totalorder %s444_s7, %s440_s29  ;;  %p448_p6 = scmp.lt.u32.totalorder %s440_s29, %s643_s20 }
 0x214   : > { %p442_p8 = pnand %p441_p5, %p699_p11 }
 0x215   : > { %p447_p3 = por %p446_p1, %p445_p0 }
 0x216   : > { %p443_p9 = pneg %p442_p8 }
 0x217   : > { %p449_p12 = por %p448_p6, %p447_p3 }
 0x219   : > { %p450_p13 = pnand %p449_p12, %p443_p9 }
 0x21b   : > { %453 = shalt.err (!%p450_p13)
}
 0x21c   : > { %348 = dma.vmem_to_hbm [thread:$0]  (%p699_p11), %s645_s11, 256, %s643_s20, %s245_s22  }
 0x21d PF: > { %s271_s23 = sand.u32 1, %s480_s12   ;;  %p700_p7 = scmp.ne.s32.totalorder %s695_s25, 0 }
 0x21e   : > { %p701_p10 = scmp.ge.s32.totalorder %s492_s15, 2  ;;  %s272_s8 = scalar_lea.sflag [#allocation4], %s271_s23 }
 0x220   : > { %p355_p2 = pnand %p701_p10, %p700_p7 }
 0x222   : > { %475 = dma.done.wait (!%p355_p2), %s272_s8, 256  }
 0x223   : > { %477 = vsyncadd (!%p355_p2), %s272_s8, 4294967040  ;;  %p16_p4 = scmp.ge.s32.totalorder %s541_s18, 4   ;;  %s702_s12 = smov %s484_s13 }
 0x224   : > { %s703_s13 = smov %s488_s14  ;;  %s704_s14 = smov %s553_s21 }
 0x225   : > { %s705_s15 = smov %s541_s18  ;;  %18 = sbr.rel (!%p16_p4) target bundleno = 5 (0x5), region = 77 }
 0x22c   :  { %277 = vsyncpa [#allocation3], 1 }
 0x22d   :  { %279 = vsyncpa [#allocation3 + $0x1], 1 }
 0x22e   :  { %280 = vsyncpa [#allocation4], 1 }
 0x22f   :  { %282 = vsyncpa [#allocation4 + $0x1], 1 }

</bundles_post_ra>
